<compile_context>
chip_gen: v5e
topology: v5e:2x2
jax: 0.10.0
libtpu: 0.0.40
codegen_flags: <defaults>
</compile_context>

<pallas_src>
import jax
import jax.numpy as jnp
from jax.experimental import pallas as pl
from jax.experimental.pallas import tpu as pltpu


# ----------------------------------------------------------------------------- helpers
def _divisors(n):
    ds = set()
    d = 1
    while d * d <= n:
        if n % d == 0:
            ds.add(d)
            ds.add(n // d)
        d += 1
    return sorted(ds)


def _largest_divisor_leq(n, limit):
    best = 1
    for d in _divisors(n):
        if d <= limit:
            best = d
    return best


def _pick_lane_group(B, F, lane_target=512):
    """How many batch rows to fold onto the lane axis for lane-dense stores."""
    if F >= 128 or B == 1:
        return 1
    best_any, best_128 = 1, 0
    for d in _divisors(B):
        if d * F <= lane_target:
            best_any = max(best_any, d)
            if (d * F) % 128 == 0:
                best_128 = max(best_128, d)
    return best_128 if best_128 else best_any


# ----------------------------------------------------------------------------- kernel
def graphnorm_kernel(x_ref, w_ref, a_ref, b_ref, o_ref):
    # x_ref: (TB, N, TF) block; stats per (batch-row, feature-lane) over the N axis.
    x = x_ref[...]
    n = x.shape[1]
    xf = x.astype(jnp.float32)

    # Fused one-pass statistics in f32.
    s1 = jnp.sum(xf, axis=1, keepdims=True)            # (TB, 1, TF)
    s2 = jnp.sum(xf * xf, axis=1, keepdims=True)       # (TB, 1, TF)
    mu = s1 * (1.0 / n)
    var = (s2 - n * mu * mu) * (1.0 / (n - 1))         # unbiased, like torch.std
    var = jnp.maximum(var, 0.0)                        # guard tiny negative cancellation
    inv_std = jax.lax.rsqrt(var)                       # EUP; no eps (matches reference)

    w = w_ref[...].astype(jnp.float32)                 # (1, TF)
    a = a_ref[...].astype(jnp.float32)
    b = b_ref[...].astype(jnp.float32)

    # Fold params + stats into a single per-lane scale/shift, then one mul+add per element.
    scale = w * inv_std                                # (TB, 1, TF)
    shift = b - a * mu * scale                         # (TB, 1, TF)
    o_ref[...] = (xf * scale + shift).astype(o_ref.dtype)


# ----------------------------------------------------------------------------- wrapper
def graph_norm(x, weight, alpha, bias, *, lane_target=512, block_bytes=4 * 1024 * 1024):
    B, N, F = x.shape
    out_dtype = x.dtype
    bytes_per_elem = jnp.dtype(x.dtype).itemsize

    # 1) Lane-dense packing: fold g batch rows onto the lane axis when F < 128.
    #    Stats are per-lane over N, so per-(b, f) semantics are preserved.
    g = _pick_lane_group(B, F, lane_target)
    Bg = B // g
    Fp = g * F
    if g > 1:
        xp = x.reshape(Bg, g, N, F).transpose(0, 2, 1, 3).reshape(Bg, N, Fp)
    else:
        xp = x

    wp = jnp.tile(weight.astype(jnp.float32), (g,)).reshape(1, Fp)
    ap = jnp.tile(alpha.astype(jnp.float32), (g,)).reshape(1, Fp)
    bp = jnp.tile(bias.astype(jnp.float32), (g,)).reshape(1, Fp)

    # 2) Feature tiling (multiples of 128) so double-buffered in+out blocks stay
    #    comfortably inside VMEM on all generations (v7x: 64 MiB physical).
    #    The N reduction stays fully inside a block, so F tiles are independent.
    TF = Fp
    if Fp % 128 == 0:
        TF = 128
        for d in sorted(_divisors(Fp // 128), reverse=True):
            tf = d * 128
            if N * tf * bytes_per_elem <= block_bytes:
                TF = tf
                break

    # 3) Multiple batch groups per grid step when a single row-block would be tiny,
    #    so each pipeline step streams a multi-KiB/MiB tile (amortizes ~0.35 us/step).
    per_row = N * TF * bytes_per_elem
    TB = _largest_divisor_leq(Bg, max(1, block_bytes // max(1, per_row)))

    grid = (Bg // TB, Fp // TF)

    out_p = pl.pallas_call(
        graphnorm_kernel,
        out_shape=jax.ShapeDtypeStruct((Bg, N, Fp), out_dtype),
        grid=grid,
        in_specs=[
            pl.BlockSpec((TB, N, TF), lambda i, j: (i, 0, j)),
            pl.BlockSpec((1, TF), lambda i, j: (0, j)),
            pl.BlockSpec((1, TF), lambda i, j: (0, j)),
            pl.BlockSpec((1, TF), lambda i, j: (0, j)),
        ],
        out_specs=pl.BlockSpec((TB, N, TF), lambda i, j: (i, 0, j)),
        compiler_params=pltpu.CompilerParams(
            # Both axes are embarrassingly parallel -> megacore / 2-TC sharding on v7x.
            dimension_semantics=("parallel", "parallel"),
        ),
    )(xp, wp, ap, bp)

    # Undo the lane packing.
    if g > 1:
        out = out_p.reshape(Bg, N, g, F).transpose(0, 2, 1, 3).reshape(B, N, F)
    else:
        out = out_p
    return out


# ----------------------------------------------------------------------------- reference
def graph_norm_ref(x, weight, alpha, bias):
    # pure-JAX reference mirroring the PyTorch forward
    xt = jnp.transpose(x, (1, 0, 2))                   # (N, B, F)
    mu = jnp.mean(xt, axis=0)                          # (B, F)
    sd = jnp.std(xt, axis=0, ddof=1)                   # (B, F), unbiased like torch
    xt = weight * (xt - alpha * mu) / sd
    return jnp.transpose(xt, (1, 0, 2)) + bias         # (B, N, F)


if __name__ == "__main__":
    B, N, F = 2, 8, 32  # batch, nodes, features

    key = jax.random.PRNGKey(0)
    kx, kw, ka, kb = jax.random.split(key, 4)
    x = jax.random.normal(kx, (B, N, F), dtype=jnp.float32)
    # deterministic stand-ins for torch.randn(features) parameters
    weight = jax.random.normal(kw, (F,), dtype=jnp.float32)
    alpha = jax.random.normal(ka, (F,), dtype=jnp.float32)
    bias = jax.random.normal(kb, (F,), dtype=jnp.float32)

    out = graph_norm(x, weight, alpha, bias)
    out = jax.block_until_ready(out)

    ref = graph_norm_ref(x, weight, alpha, bias)
    assert out.shape == (B, N, F)
    assert jnp.allclose(out, ref, atol=1e-4, rtol=1e-4), float(jnp.max(jnp.abs(out - ref)))

    print("KERNEL_OK")
</pallas_src>

<mosaic_0001>
module attributes {stable_mosaic.version = 11 : i64} {
  func.func @graphnorm_kernel(%arg0: i32, %arg1: i32, %arg2: memref<1x8x64xf32, #tpu.memory_space<vmem>>, %arg3: memref<1x64xf32, #tpu.memory_space<vmem>>, %arg4: memref<1x64xf32, #tpu.memory_space<vmem>>, %arg5: memref<1x64xf32, #tpu.memory_space<vmem>>, %arg6: memref<1x8x64xf32, #tpu.memory_space<vmem>>) attributes {dimension_semantics = [#tpu.dimension_semantics<parallel>, #tpu.dimension_semantics<parallel>], iteration_bounds = array<i64: 1, 1>, scalar_prefetch = 0 : i64, scratch_operands = 0 : i64, tpu.core_type = #tpu.core_type<tc>, window_params = [{transform_indices = @transform_0, window_bounds = array<i64: 1, 8, 64>}, {transform_indices = @transform_1, window_bounds = array<i64: 1, 64>}, {transform_indices = @transform_2, window_bounds = array<i64: 1, 64>}, {transform_indices = @transform_3, window_bounds = array<i64: 1, 64>}, {transform_indices = @transform_4, window_bounds = array<i64: 1, 8, 64>}]} {
    %c0 = arith.constant 0 : index
    %c0_0 = arith.constant 0 : index
    %c0_1 = arith.constant 0 : index
    %0 = vector.load %arg2[%c0, %c0_0, %c0_1] : memref<1x8x64xf32, #tpu.memory_space<vmem>>, vector<1x8x64xf32>
    %cst = arith.constant dense<0.000000e+00> : vector<1x64xf32>
    %1 = vector.multi_reduction <add>, %0, %cst [1] : vector<1x8x64xf32> to vector<1x64xf32>
    %2 = vector.shape_cast %1 : vector<1x64xf32> to vector<1x1x64xf32>
    %3 = arith.mulf %0, %0 : vector<1x8x64xf32>
    %cst_2 = arith.constant dense<0.000000e+00> : vector<1x64xf32>
    %4 = vector.multi_reduction <add>, %3, %cst_2 [1] : vector<1x8x64xf32> to vector<1x64xf32>
    %5 = vector.shape_cast %4 : vector<1x64xf32> to vector<1x1x64xf32>
    %cst_3 = arith.constant 1.250000e-01 : f32
    %6 = vector.broadcast %cst_3 : f32 to vector<1x1x64xf32>
    %7 = arith.mulf %2, %6 : vector<1x1x64xf32>
    %cst_4 = arith.constant 8.000000e+00 : f32
    %8 = vector.broadcast %cst_4 : f32 to vector<1x1x64xf32>
    %9 = arith.mulf %8, %7 : vector<1x1x64xf32>
    %10 = arith.mulf %9, %7 : vector<1x1x64xf32>
    %11 = arith.subf %5, %10 : vector<1x1x64xf32>
    %cst_5 = arith.constant 0.142857149 : f32
    %12 = vector.broadcast %cst_5 : f32 to vector<1x1x64xf32>
    %13 = arith.mulf %11, %12 : vector<1x1x64xf32>
    %cst_6 = arith.constant 0.000000e+00 : f32
    %14 = vector.broadcast %cst_6 : f32 to vector<1x1x64xf32>
    %15 = arith.maximumf %13, %14 : vector<1x1x64xf32>
    %16 = math.rsqrt %15 : vector<1x1x64xf32>
    %c0_7 = arith.constant 0 : index
    %c0_8 = arith.constant 0 : index
    %17 = vector.load %arg3[%c0_7, %c0_8] : memref<1x64xf32, #tpu.memory_space<vmem>>, vector<1x64xf32>
    %c0_9 = arith.constant 0 : index
    %c0_10 = arith.constant 0 : index
    %18 = vector.load %arg4[%c0_9, %c0_10] : memref<1x64xf32, #tpu.memory_space<vmem>>, vector<1x64xf32>
    %c0_11 = arith.constant 0 : index
    %c0_12 = arith.constant 0 : index
    %19 = vector.load %arg5[%c0_11, %c0_12] : memref<1x64xf32, #tpu.memory_space<vmem>>, vector<1x64xf32>
    %20 = vector.shape_cast %17 : vector<1x64xf32> to vector<1x1x64xf32>
    %21 = arith.mulf %20, %16 : vector<1x1x64xf32>
    %22 = vector.shape_cast %18 : vector<1x64xf32> to vector<1x1x64xf32>
    %23 = arith.mulf %22, %7 : vector<1x1x64xf32>
    %24 = arith.mulf %23, %21 : vector<1x1x64xf32>
    %25 = vector.shape_cast %19 : vector<1x64xf32> to vector<1x1x64xf32>
    %26 = arith.subf %25, %24 : vector<1x1x64xf32>
    %27 = vector.broadcast %21 : vector<1x1x64xf32> to vector<1x8x64xf32>
    %28 = arith.mulf %0, %27 : vector<1x8x64xf32>
    %29 = vector.broadcast %26 : vector<1x1x64xf32> to vector<1x8x64xf32>
    %30 = arith.addf %28, %29 : vector<1x8x64xf32>
    %c0_13 = arith.constant 0 : index
    %c0_14 = arith.constant 0 : index
    %c0_15 = arith.constant 0 : index
    %31 = vector.load %arg6[%c0_13, %c0_14, %c0_15] : memref<1x8x64xf32, #tpu.memory_space<vmem>>, vector<1x8x64xf32>
    tpu.vector_store %arg6[%c0_13, %c0_14, %c0_15], %30 {strides = array<i32>} : memref<1x8x64xf32, #tpu.memory_space<vmem>>, vector<1x8x64xf32>,
    return
  }
  func.func @transform_0(%arg0: i32, %arg1: i32) -> (i32, i32, i32) {
    %c0_i32 = arith.constant 0 : i32
    %c0_i32_0 = arith.constant 0 : i32
    return %arg0, %c0_i32, %arg1 : i32, i32, i32
  }
  func.func @transform_1(%arg0: i32, %arg1: i32) -> (i32, i32) {
    %c0_i32 = arith.constant 0 : i32
    %c0_i32_0 = arith.constant 0 : i32
    return %c0_i32, %arg1 : i32, i32
  }
  func.func @transform_2(%arg0: i32, %arg1: i32) -> (i32, i32) {
    %c0_i32 = arith.constant 0 : i32
    %c0_i32_0 = arith.constant 0 : i32
    return %c0_i32, %arg1 : i32, i32
  }
  func.func @transform_3(%arg0: i32, %arg1: i32) -> (i32, i32) {
    %c0_i32 = arith.constant 0 : i32
    %c0_i32_0 = arith.constant 0 : i32
    return %c0_i32, %arg1 : i32, i32
  }
  func.func @transform_4(%arg0: i32, %arg1: i32) -> (i32, i32, i32) {
    %c0_i32 = arith.constant 0 : i32
    %c0_i32_0 = arith.constant 0 : i32
    return %arg0, %c0_i32, %arg1 : i32, i32, i32
  }
}

</mosaic_0001>

<bundles_post_ra>
// kernel: tpu_custom_call.1
= control target key start
LH: loop header
LB: loop body
LE: loop exit
PB: predicated region body
PF: predicated region fallthrough
CT: control target
= control target key end

     0   :  { %9 = vsyncpa [#allocation3], 0  ;;  %s242_s0 = inlined_call_operand.hbm [shape: f32[1,8,64], index: 0, kind: input, shape index: {}]   ;;  %s243_s1 = inlined_call_operand.hbm [shape: f32[1,64], index: 1, kind: input, shape index: {}]   ;;  %s244_s2 = inlined_call_operand.vmem [shape: f32[1,64], index: 2, kind: input, shape index: {}]   ;;  %s245_s3 = inlined_call_operand.vmem [shape: f32[1,64], index: 3, kind: input, shape index: {}]   ;;  %s246_s4 = inlined_call_operand.hbm [shape: f32[1,8,64], index: 4, kind: output, shape index: {}]  }
   0x1   :  { %10 = vsyncpa [#allocation6], 0 }
   0x2   :  { %11 = vsyncpa [#allocation4], 0  ;;  %s17_s17 = sshll.u32 %s242_s0, 4  ;;  %s196_s18 = smov [#allocation2]   ;;  %s18_s17 = int_to_ptr.hbm [resolvable:$true] %s17_s17 }
   0x3   :  { %s19_s19 = sshll.u32 %s196_s18, 4  ;;  %s28_s22 = sshll.u32 %s243_s1, 4  ;;  %s20_s19 = int_to_ptr.vmem [resolvable:$true] %s19_s19  ;;  %s29_s22 = int_to_ptr.hbm [resolvable:$true] %s28_s22 }
   0x4   :  { %22 = dma.hbm_to_vmem [thread:$0]  %s18_s17, 128, %s20_s19, [#allocation3]  }
   0x5   :  { %s197_s23 = smov [#allocation5]  }
   0x6   :  { %s30_s24 = sshll.u32 %s197_s23, 4  ;;  %s31_s24 = int_to_ptr.vmem [resolvable:$true] %s30_s24 }
   0x7   :  { %33 = dma.hbm_to_vmem [thread:$0]  %s29_s22, 16, %s31_s24, [#allocation6]  }
   0x8   :  { %190 = dma.done.wait [#allocation3], 128  }
   0x9   :  { %191 = vsyncadd [#allocation3], 4294967168 }
   0xa   :  { %192 = dma.done.wait [#allocation6], 16  }
   0xb   :  { %193 = vsyncadd [#allocation6], 4294967280  ;;  %vm47_vm0 = vcmask 523264   ;;  %v46_v0 = vld [vmem:[#allocation2] sm:$0xff]  ;;  %v79_v29 = vld [vmem:[#allocation5] sm:$0x1] }
   0xc   :  { %v48_v1 = vsel %vm47_vm0, %v46_v0, 0.0  ;;  %v55_v2 = vmul.f32 %v46_v0, %v46_v0  ;;  %v80_v27 = vld [vmem:[%s244_s2] sm:$0x1]  ;;  %s198_s27 = smov [#allocation7]   ;;  %s102_s2 = sshll.u32 %s246_s4, 4  ;;  %s103_s2 = int_to_ptr.hbm [resolvable:$true] %s102_s2 }
   0xd   :  { %v49_v3 = vrot.slane %v48_v1, 4  ;;  %v81_v33 = vld [vmem:[%s245_s3] sm:$0x1]  ;;  %s100_s28 = sshll.u32 %s198_s27, 4  ;;  %s101_s28 = int_to_ptr.vmem [resolvable:$true] %s100_s28 }
   0xe   :  { %v56_v4 = vsel %vm47_vm0, %v55_v2, 0.0 }
   0xf   :  { %v50_v5 = vadd.f32 %v49_v3, %v48_v1  ;;  %v57_v6 = vrot.slane %v56_v4, 4 }
  0x11   :  { %v51_v7 = vrot.slane %v50_v5, 2  ;;  %v58_v8 = vadd.f32 %v57_v6, %v56_v4 }
  0x13   :  { %v52_v9 = vadd.f32 %v51_v7, %v50_v5  ;;  %v59_v10 = vrot.slane %v58_v8, 2 }
  0x15   :  { %v53_v11 = vrot.slane %v52_v9, 1  ;;  %v60_v12 = vadd.f32 %v59_v10, %v58_v8 }
  0x17   :  { %v54_v13 = vadd.f32 %v53_v11, %v52_v9  ;;  %v61_v14 = vrot.slane %v60_v12, 1 }
  0x19   :  { %v63_v15 = vmul.f32 0.125, %v54_v13  ;;  %v62_v16 = vadd.f32 %v61_v14, %v60_v12 }
  0x1b   :  { %v64_v17 = vmul.f32 8.0, %v63_v15  ;;  %v83_v30 = vmul.f32 %v80_v27, %v63_v15 }
  0x1d   :  { %v65_v18 = vmul.f32 %v64_v17, %v63_v15 }
  0x1f   :  { %v66_v19 = vsub.f32 %v62_v16, %v65_v18 }
  0x21   :  { %v67_v20 = vmul.f32 0.14285715, %v66_v19 }
  0x23   :  { %v68_v21 = vmax.f32 %v67_v20, 0.0 }
  0x25   :  { %116 = vrsqrt.f32 %v68_v21  ;;  %vm75_vm1 = vweird.f32 %v68_v21 }
  0x2b   :  { %v117_v22 = vpop.eup %116 }
  0x2c   :  { %v70_v23 = vmul.f32 %v117_v22, %v68_v21  ;;  %vm76_vm2 = vweird.f32 %v117_v22 }
  0x2d   :  { %vm77_vm3 = vmor %vm75_vm1, %vm76_vm2 }
  0x2e   :  { %v71_v24 = vmul.f32 %v117_v22, %v70_v23 }
  0x30   :  { %v72_v25 = vmul.f32 0.5, %v71_v24 }
  0x32   :  { %v73_v26 = vsub.f32 1.5, %v72_v25 }
  0x34   :  { %v74_v28 = vmul.f32 %v117_v22, %v73_v26 }
  0x36   :  { %v78_v31 = vsel %vm77_vm3, %v117_v22, %v74_v28 }
  0x37   :  { %v82_v32 = vmul.f32 %v79_v29, %v78_v31 }
  0x39   :  { %v84_v34 = vmul.f32 %v83_v30, %v82_v32  ;;  %v87_v35 = vperm.slane %v82_v32, 0 }
  0x3b   :  { %v85_v36 = vsub.f32 %v81_v33, %v84_v34  ;;  %v89_v37 = vmul.f32 %v87_v35, %v46_v0 }
  0x3d   :  { %v91_v38 = vperm.slane %v85_v36, 0 }
  0x3f   :  { %v93_v39 = vadd.f32 %v91_v38, %v89_v37 }
  0x41   :  { %94 = vst.msk [vmem:[#allocation7] sm:$0xff] %vm47_vm0, %v93_v39 }
  0x42   :  { %105 = dma.vmem_to_hbm [thread:$0]  %s101_s28, 128, %s103_s2, [#allocation4]  }
  0x43   :  { %194 = dma.done.wait [#allocation4], 128  }
  0x44   :  { %195 = vsyncadd [#allocation4], 4294967168 }
  0x45   :  { %110 = vsyncpa [#allocation3], 1 }
  0x46   :  { %111 = vsyncpa [#allocation6], 1 }
  0x47   :  { %112 = vsyncpa [#allocation4], 1 }

</bundles_post_ra>
